<compile_context>
chip_gen: v7x
topology: tpu7x:2x2x1
jax: 0.10.0
libtpu: 0.0.40
codegen_flags: <defaults>
</compile_context>

<pallas_src>
from functools import partial

import jax
import jax.numpy as jnp
import numpy as np
from jax.experimental import pallas as pl
from jax.experimental.pallas import tpu as pltpu

_BIG = 1e30  # sentinel; assumes |time - pred| << 1e30 (f32-safe: 2*BIG finite)


def _round_up(x, m):
    return ((x + m - 1) // m) * m


def _cdiv(a, b):
    return -(-a // b)


def _pick_tiles(n, tile_m=None, tile_n=None):
    """Balanced (TM, TN, vmem_limit_bytes) per TPU generation."""
    kind = ""
    try:
        kind = jax.devices()[0].device_kind.lower()
    except Exception:
        pass
    large_vmem = ("v5" in kind) or ("v6" in kind)          # 128 MiB VMEM chips
    tm_max = tile_m if tile_m is not None else (1024 if large_vmem else 512)
    tn_max = tile_n if tile_n is not None else 1024
    # Smallest tiles that cover N with the same number of grid steps as the
    # max tile would -> minimal padding waste, maximal per-step work.
    num_i = max(1, _cdiv(n, max(1, tm_max)))
    num_j = max(1, _cdiv(n, max(1, tn_max)))
    tm = max(8, _round_up(_cdiv(n, num_i), 8))             # multiple of 8
    tn = max(128, _round_up(_cdiv(n, num_j), 128))         # multiple of 128
    vmem_limit = (96 if large_vmem else 48) << 20
    return tm, tn, vmem_limit


def _rank_deepsurv_kernel(r_row_ref, r_col_ref, l1_col_ref, out_ref, acc_ref,
                          *, alpha, beta, inv_n):
    j = pl.program_id(1)

    # ---- init L2 accumulator for this i tile ------------------------------
    @pl.when(j == 0)
    def _init():
        acc_ref[...] = jnp.zeros_like(acc_ref)

    # ---- O(TM*TN) pairwise ranking term (masks pre-folded via sentinels) --
    dd = r_row_ref[...] - r_col_ref[...]          # (TM, TN) == (t_j-t_i)-(p_j-p_i)
    acc_ref[...] += jnp.square(jnp.maximum(dd, 0.0))

    # ---- finalize: add this tile's L1, reduce, scale -----------------------
    @pl.when(j == pl.num_programs(1) - 1)
    def _finish():
        l1_i = jnp.sum(l1_col_ref[...])           # (TM, 1) precomputed per-elem L1
        l2_i = jnp.sum(acc_ref[...])
        total = (alpha * l1_i + beta * l2_i) * inv_n
        rows = jax.lax.broadcasted_iota(jnp.int32, out_ref.shape, 0)
        cols = jax.lax.broadcasted_iota(jnp.int32, out_ref.shape, 1)
        out_ref[...] = jnp.where((rows == 0) & (cols == 0), total, 0.0)


def rank_deepsurv_loss(pred, time, event, alpha=1.0, beta=1.0,
                       tile_m=None, tile_n=None):
    """pred: (N,) or (N, 1); time: (N,); event: (N,) of {0, 1}."""
    pred = jnp.reshape(jnp.asarray(pred, jnp.float32), (-1,))
    time = jnp.reshape(jnp.asarray(time, jnp.float32), (-1,))
    event = jnp.reshape(jnp.asarray(event, jnp.float32), (-1,))
    n = int(event.shape[0])

    # Shared O(N) precompute (tiny; replaces O(N^2) in-kernel mask work).
    r = time - pred
    unc = event == 1.0                                     # uncensored indicator
    # L1 mask: (e==1) | ((e==0) & (p<=t)); (p<=t) <=> r>=0; mse = r^2.
    l1_mask = unc | ((event == 0.0) & (r >= 0.0))
    l1_elem = jnp.where(l1_mask, r * r, 0.0)
    # Sentinel-masked r: censored-as-j -> -BIG, censored-as-i -> +BIG, so
    # relu(r_j - r_i) == 0 whenever either endpoint is censored.
    r_row_m = jnp.where(unc, r, jnp.float32(-_BIG))
    r_col_m = jnp.where(unc, r, jnp.float32(_BIG))

    tm, tn, vmem_limit = _pick_tiles(n, tile_m, tile_n)
    npi, npj = _round_up(n, tm), _round_up(n, tn)
    num_i, num_j = npi // tm, npj // tn
    pad_i, pad_j = npi - n, npj - n

    # Padded samples carry sentinel r (and 0 L1) -> contribute exactly 0.
    r_col = jnp.pad(r_col_m, (0, pad_i), constant_values=_BIG).reshape(npi, 1)
    l1_col = jnp.pad(l1_elem, (0, pad_i)).reshape(npi, 1)
    r_row = jnp.pad(r_row_m, (0, pad_j), constant_values=-_BIG).reshape(1, npj)

    kernel = partial(_rank_deepsurv_kernel,
                     alpha=float(alpha), beta=float(beta), inv_n=1.0 / float(n))

    out = pl.pallas_call(
        kernel,
        out_shape=jax.ShapeDtypeStruct((num_i * 8, 128), jnp.float32),
        grid_spec=pltpu.PrefetchScalarGridSpec(
            num_scalar_prefetch=0,
            grid=(num_i, num_j),
            in_specs=[
                pl.BlockSpec((1, tn), lambda i, j: (0, j)),   # r_row (sentinel-masked)
                pl.BlockSpec((tm, 1), lambda i, j: (i, 0)),   # r_col (sentinel-masked)
                pl.BlockSpec((tm, 1), lambda i, j: (i, 0)),   # per-element L1
            ],
            out_specs=pl.BlockSpec((8, 128), lambda i, j: (i, 0)),
            scratch_shapes=[pltpu.VMEM((tm, tn), jnp.float32)],
        ),
        compiler_params=pltpu.CompilerParams(
            dimension_semantics=("parallel", "arbitrary"),
            vmem_limit_bytes=vmem_limit,
        ),
    )(r_row, r_col, l1_col)

    # Tiny final reduction of the per-i-tile partial sums (done in JAX so the
    # i grid axis can be genuinely parallel across TensorCores).
    return jnp.sum(out)


def _reference(pred, time, event, alpha=1.0, beta=1.0):
    # Pure-JAX replica of the exact PyTorch semantics.
    pred = jnp.reshape(jnp.asarray(pred, jnp.float32), (-1,))
    time = jnp.reshape(jnp.asarray(time, jnp.float32), (-1,))
    event = jnp.reshape(jnp.asarray(event, jnp.float32), (-1,))
    n = event.shape[0]
    mse1 = (pred - time) ** 2
    mask1 = (event == 1) | ((event == 0) & (pred <= time))
    l1 = jnp.sum(jnp.where(mask1, mse1, 0.0)) / n
    ti, tj = time[:, None], time[None, :]
    pi, pj = pred[:, None], pred[None, :]
    ei, ej = event[:, None], event[None, :]
    td, pd = tj - ti, pj - pi
    comp = (((ej == 1) & (ei == 1)) | ((ej == 0) & (ei == 1) & (ei <= ej))) & (td > pd)
    l2 = jnp.sum(jnp.where(comp, (td - pd) ** 2, 0.0)) / n
    return alpha * l1 + beta * l2


if __name__ == "__main__":
    key = jax.random.PRNGKey(0)
    k1, k2, k3 = jax.random.split(key, 3)
    N = 200
    pred = jax.random.normal(k1, (N, 1), dtype=jnp.float32)           # model risk scores
    time = jax.random.uniform(k2, (N,), dtype=jnp.float32) * 10.0     # survival times
    event = jax.random.bernoulli(k3, 0.6, (N,)).astype(jnp.float32)   # censoring indicator

    # Default (generation-aware) tiles: single-tile grid at this small N.
    loss = rank_deepsurv_loss(pred, time, event, alpha=1.0, beta=1.0)
    loss = jax.block_until_ready(loss)
    ref = _reference(pred, time, event, alpha=1.0, beta=1.0)
    np.testing.assert_allclose(np.asarray(loss), np.asarray(ref), rtol=1e-4, atol=1e-4)

    # Force small tiles to exercise the multi-tile grid, sentinel padding and
    # the per-i-tile accumulate/finalize path (grid = (4, 2) here).
    loss2 = rank_deepsurv_loss(pred, time, event, alpha=0.7, beta=1.3,
                               tile_m=64, tile_n=128)
    loss2 = jax.block_until_ready(loss2)
    ref2 = _reference(pred, time, event, alpha=0.7, beta=1.3)
    np.testing.assert_allclose(np.asarray(loss2), np.asarray(ref2), rtol=1e-4, atol=1e-4)

    print("KERNEL_OK")
</pallas_src>

<mosaic_0001>
module attributes {stable_mosaic.version = 11 : i64} {
  func.func @_rank_deepsurv_kernel(%arg0: i32, %arg1: i32, %arg2: memref<1x256xf32, #tpu.memory_space<vmem>>, %arg3: memref<200x1xf32, #tpu.memory_space<vmem>>, %arg4: memref<200x1xf32, #tpu.memory_space<vmem>>, %arg5: memref<8x128xf32, #tpu.memory_space<vmem>>, %arg6: memref<200x256xf32, #tpu.memory_space<vmem>>) attributes {dimension_semantics = [#tpu.dimension_semantics<parallel>, #tpu.dimension_semantics<arbitrary>], iteration_bounds = array<i64: 1, 1>, scalar_prefetch = 0 : i64, scratch_operands = 1 : i64, tpu.core_type = #tpu.core_type<tc>, window_params = [{transform_indices = @transform_0, window_bounds = array<i64: 1, 256>}, {transform_indices = @transform_1, window_bounds = array<i64: 200, 1>}, {transform_indices = @transform_2, window_bounds = array<i64: 200, 1>}, {transform_indices = @transform_3, window_bounds = array<i64: 8, 128>}]} {
    %c0_i32 = arith.constant 0 : i32
    %0 = arith.cmpi eq, %arg1, %c0_i32 : i32
    %1 = arith.extui %0 : i1 to i32
    %c0_i32_0 = arith.constant 0 : i32
    %2 = arith.cmpi ne, %1, %c0_i32_0 : i32
    scf.if %2 {
      %cst_10 = arith.constant 0.000000e+00 : f32
      %17 = vector.broadcast %cst_10 : f32 to vector<200x256xf32>
      %c0_11 = arith.constant 0 : index
      %c0_12 = arith.constant 0 : index
      %18 = vector.load %arg6[%c0_11, %c0_12] : memref<200x256xf32, #tpu.memory_space<vmem>>, vector<200x256xf32>
      tpu.vector_store %arg6[%c0_11, %c0_12], %17 {strides = array<i32>} : memref<200x256xf32, #tpu.memory_space<vmem>>, vector<200x256xf32>,
    } else {
    }
    %c0 = arith.constant 0 : index
    %c0_1 = arith.constant 0 : index
    %3 = vector.load %arg2[%c0, %c0_1] : memref<1x256xf32, #tpu.memory_space<vmem>>, vector<1x256xf32>
    %c0_2 = arith.constant 0 : index
    %c0_3 = arith.constant 0 : index
    %4 = vector.load %arg3[%c0_2, %c0_3] : memref<200x1xf32, #tpu.memory_space<vmem>>, vector<200x1xf32>
    %5 = vector.broadcast %3 : vector<1x256xf32> to vector<200x256xf32>
    %6 = vector.broadcast %4 : vector<200x1xf32> to vector<200x256xf32>
    %7 = arith.subf %5, %6 : vector<200x256xf32>
    %c0_4 = arith.constant 0 : index
    %c0_5 = arith.constant 0 : index
    %8 = vector.load %arg6[%c0_4, %c0_5] : memref<200x256xf32, #tpu.memory_space<vmem>>, vector<200x256xf32>
    %cst = arith.constant 0.000000e+00 : f32
    %9 = vector.broadcast %cst : f32 to vector<200x256xf32>
    %10 = arith.maximumf %7, %9 : vector<200x256xf32>
    %11 = arith.mulf %10, %10 : vector<200x256xf32>
    %12 = arith.addf %8, %11 : vector<200x256xf32>
    %c0_6 = arith.constant 0 : index
    %c0_7 = arith.constant 0 : index
    %13 = vector.load %arg6[%c0_6, %c0_7] : memref<200x256xf32, #tpu.memory_space<vmem>>, vector<200x256xf32>
    tpu.vector_store %arg6[%c0_6, %c0_7], %12 {strides = array<i32>} : memref<200x256xf32, #tpu.memory_space<vmem>>, vector<200x256xf32>,
    %c0_i32_8 = arith.constant 0 : i32
    %14 = arith.cmpi eq, %arg1, %c0_i32_8 : i32
    %15 = arith.extui %14 : i1 to i32
    %c0_i32_9 = arith.constant 0 : i32
    %16 = arith.cmpi ne, %15, %c0_i32_9 : i32
    scf.if %16 {
      %c0_10 = arith.constant 0 : index
      %c0_11 = arith.constant 0 : index
      %17 = vector.load %arg4[%c0_10, %c0_11] : memref<200x1xf32, #tpu.memory_space<vmem>>, vector<200x1xf32>
      %18 = vector.shape_cast %17 : vector<200x1xf32> to vector<1x200x1xf32>
      %cst_12 = arith.constant dense<0.000000e+00> : vector<1xf32>
      %19 = vector.multi_reduction <add>, %18, %cst_12 [1, 2] : vector<1x200x1xf32> to vector<1xf32>
      %20 = vector.shape_cast %19 : vector<1xf32> to vector<1x1x1xf32>
      %21 = vector.extract %20[0, 0, 0] : f32 from vector<1x1x1xf32>
      %c0_13 = arith.constant 0 : index
      %c0_14 = arith.constant 0 : index
      %22 = vector.load %arg6[%c0_13, %c0_14] : memref<200x256xf32, #tpu.memory_space<vmem>>, vector<200x256xf32>
      %23 = vector.shape_cast %22 : vector<200x256xf32> to vector<1x200x256xf32>
      %cst_15 = arith.constant dense<0.000000e+00> : vector<1xf32>
      %24 = vector.multi_reduction <add>, %23, %cst_15 [1, 2] : vector<1x200x256xf32> to vector<1xf32>
      %25 = vector.shape_cast %24 : vector<1xf32> to vector<1x1x1xf32>
      %26 = vector.extract %25[0, 0, 0] : f32 from vector<1x1x1xf32>
      %cst_16 = arith.constant 1.000000e+00 : f32
      %27 = arith.mulf %cst_16, %21 : f32
      %cst_17 = arith.constant 1.000000e+00 : f32
      %28 = arith.mulf %cst_17, %26 : f32
      %29 = arith.addf %27, %28 : f32
      %cst_18 = arith.constant 5.000000e-03 : f32
      %30 = arith.mulf %29, %cst_18 : f32
      %31 = tpu.iota {dimensions = array<i32: 0>} : vector<8x128xi32>
      %32 = tpu.iota {dimensions = array<i32: 1>} : vector<8x128xi32>
      %c0_i32_19 = arith.constant 0 : i32
      %33 = vector.broadcast %c0_i32_19 : i32 to vector<8x128xi32>
      %34 = arith.cmpi eq, %31, %33 : vector<8x128xi32>
      %c0_i32_20 = arith.constant 0 : i32
      %35 = vector.broadcast %c0_i32_20 : i32 to vector<8x128xi32>
      %36 = arith.cmpi eq, %32, %35 : vector<8x128xi32>
      %37 = arith.andi %34, %36 : vector<8x128xi1>
      %cst_21 = arith.constant 0.000000e+00 : f32
      %38 = vector.broadcast %30 : f32 to vector<8x128xf32>
      %39 = vector.broadcast %cst_21 : f32 to vector<8x128xf32>
      %40 = arith.select %37, %38, %39 : vector<8x128xi1>, vector<8x128xf32>
      %c0_22 = arith.constant 0 : index
      %c0_23 = arith.constant 0 : index
      %41 = vector.load %arg5[%c0_22, %c0_23] : memref<8x128xf32, #tpu.memory_space<vmem>>, vector<8x128xf32>
      tpu.vector_store %arg5[%c0_22, %c0_23], %40 {strides = array<i32>} : memref<8x128xf32, #tpu.memory_space<vmem>>, vector<8x128xf32>,
    } else {
    }
    return
  }
  func.func @transform_0(%arg0: i32, %arg1: i32) -> (i32, i32) {
    %c0_i32 = arith.constant 0 : i32
    %c0_i32_0 = arith.constant 0 : i32
    return %c0_i32, %arg1 : i32, i32
  }
  func.func @transform_1(%arg0: i32, %arg1: i32) -> (i32, i32) {
    %c0_i32 = arith.constant 0 : i32
    %c0_i32_0 = arith.constant 0 : i32
    return %arg0, %c0_i32 : i32, i32
  }
  func.func @transform_2(%arg0: i32, %arg1: i32) -> (i32, i32) {
    %c0_i32 = arith.constant 0 : i32
    %c0_i32_0 = arith.constant 0 : i32
    return %arg0, %c0_i32 : i32, i32
  }
  func.func @transform_3(%arg0: i32, %arg1: i32) -> (i32, i32) {
    %c0_i32 = arith.constant 0 : i32
    %c0_i32_0 = arith.constant 0 : i32
    return %arg0, %c0_i32 : i32, i32
  }
}

</mosaic_0001>

<bundles_post_ra>
// kernel: tpu_custom_call.1
= control target key start
LH: loop header
LB: loop body
LE: loop exit
PB: predicated region body
PF: predicated region fallthrough
CT: control target
= control target key end

     0   :  { %v784_v2 = vmov 0   ;;  %s1057_s0 = inlined_call_operand.vmem [shape: f32[1,256], index: 0, kind: input, shape index: {}]   ;;  %s1058_s1 = inlined_call_operand.vmem [shape: f32[200,1], index: 1, kind: input, shape index: {}]   ;;  %s1059_s2 = inlined_call_operand.vmem [shape: f32[200,1], index: 2, kind: input, shape index: {}]   ;;  %s1060_s3 = inlined_call_operand.hbm [shape: f32[8,128], index: 3, kind: output, shape index: {}]  }
   0x1   :  { %v72_v0 = vld [vmem:[%s1058_s1 + $0x10] sm:$0xff]  ;;  %v70_v1 = vld [vmem:[%s1058_s1] sm:$0xff]  ;;  %759 = vset.pattern.permute.xlu1 %v784_v2  ;;  %758 = vset.pattern.permute.xlu0 %v784_v2  ;;  %v73_v3 = vld [vmem:[%s1058_s1 + $0x18] sm:$0xff] }
   0x2   :  { %118 = vperm.xlu1 %759, %v72_v0   ;;  %108 = vperm.xlu0 %758, %v70_v1   ;;  %v71_v4 = vld [vmem:[%s1058_s1 + $0x8] sm:$0xff]  ;;  %v74_v6 = vld [vmem:[%s1058_s1 + $0x20] sm:$0xff] }
   0x3   :  { %v75_v5 = vld [vmem:[%s1058_s1 + $0x28] sm:$0xff] }
   0x6   :  { %123 = vperm.xlu1 %759, %v73_v3   ;;  %113 = vperm.xlu0 %758, %v71_v4  }
   0x7   :  { %8 = vsyncpa [#allocation4], 0  ;;  %v77_v7 = vld [vmem:[%s1058_s1 + $0x38] sm:$0xff]  ;;  %v76_v8 = vld [vmem:[%s1058_s1 + $0x30] sm:$0xff]  ;;  %vm559_vm0 = vcmask 7168   ;;  %s785_s5 = smov [#allocation3]  }
   0x8   :  { %v79_v9 = vld [vmem:[%s1058_s1 + $0x48] sm:$0xff]  ;;  %v78_v10 = vld [vmem:[%s1058_s1 + $0x40] sm:$0xff]  ;;  %v81_v11 = vld [vmem:[%s1058_s1 + $0x58] sm:$0xff]  ;;  %s744_s6 = sshll.u32 %s785_s5, 4  ;;  %s745_s6 = int_to_ptr.vmem [resolvable:$true] %s744_s6 }
   0x9   :  { %v80_v12 = vld [vmem:[%s1058_s1 + $0x50] sm:$0xff]  ;;  %v83_v13 = vld [vmem:[%s1058_s1 + $0x68] sm:$0xff]  ;;  %v82_v14 = vld [vmem:[%s1058_s1 + $0x60] sm:$0xff]  ;;  %s760_s8 = scalar_lea.vmem %s745_s6, 128  ;;  %p765_p1 = scmp.lt.s32.totalorder %s745_s6, %s745_s6 }
   0xa   :  { %133 = vperm.xlu1 %759, %v75_v5   ;;  %128 = vperm.xlu0 %758, %v74_v6   ;;  %v85_v15 = vld [vmem:[%s1058_s1 + $0x78] sm:$0xff]  ;;  %v84_v16 = vld [vmem:[%s1058_s1 + $0x70] sm:$0xff]  ;;  %v87_v17 = vld [vmem:[%s1058_s1 + $0x88] sm:$0xff]  ;;  %p761_p0 = scmp.ne.s32.totalorder %s745_s6, %s760_s8  ;;  %p766_p2 = scmp.lt.s32.totalorder %s760_s8, %s760_s8 }
   0xb   :  { %v86_v18 = vld [vmem:[%s1058_s1 + $0x80] sm:$0xff]  ;;  %v89_v19 = vld [vmem:[%s1058_s1 + $0x98] sm:$0xff]  ;;  %v88_v20 = vld [vmem:[%s1058_s1 + $0x90] sm:$0xff] }
   0xc   :  { %v91_v21 = vld [vmem:[%s1058_s1 + $0xa8] sm:$0xff]  ;;  %v90_v22 = vld [vmem:[%s1058_s1 + $0xa0] sm:$0xff]  ;;  %v93_v23 = vld [vmem:[%s1058_s1 + $0xb8] sm:$0xff]  ;;  %p767_p3 = por %p766_p2, %p765_p1 }
   0xd   :  { %v92_v24 = vld [vmem:[%s1058_s1 + $0xb0] sm:$0xff]  ;;  %v94_v25 = vld [vmem:[%s1058_s1 + $0xc0] sm:$0xff]  ;;  %v535_v27 = vld [vmem:[%s1059_s2 + $0x8] sm:$0xff] }
   0xe   :  { %143 = vperm.xlu1 %759, %v77_v7   ;;  %138 = vperm.xlu0 %758, %v76_v8   ;;  %v534_v26 = vld [vmem:[%s1059_s2] sm:$0xff]  ;;  %v561_v29 = vsel %vm559_vm0, %v535_v27, 0.0  ;;  %v536_v30 = vld [vmem:[%s1059_s2 + $0x10] sm:$0xff]  ;;  %v537_v33 = vld [vmem:[%s1059_s2 + $0x18] sm:$0xff]  ;;  %p768_p4 = pnand %p767_p3, %p761_p0 }
   0xf   :  { %v560_v28 = vsel %vm559_vm0, %v534_v26, 0.0  ;;  %v563_v32 = vsel %vm559_vm0, %v536_v30, 0.0  ;;  %v565_v35 = vsel %vm559_vm0, %v537_v33, 0.0  ;;  %v538_v36 = vld [vmem:[%s1059_s2 + $0x20] sm:$0xff]  ;;  %v539_v39 = vld [vmem:[%s1059_s2 + $0x28] sm:$0xff]  ;;  %v540_v42 = vld [vmem:[%s1059_s2 + $0x30] sm:$0xff] }
  0x10   :  { %v562_v31 = vadd.f32 %v561_v29, %v560_v28  ;;  %v567_v38 = vsel %vm559_vm0, %v538_v36, 0.0  ;;  %v569_v41 = vsel %vm559_vm0, %v539_v39, 0.0  ;;  %v571_v44 = vsel %vm559_vm0, %v540_v42, 0.0  ;;  %v541_v45 = vld [vmem:[%s1059_s2 + $0x38] sm:$0xff]  ;;  %v542_v48 = vld [vmem:[%s1059_s2 + $0x40] sm:$0xff]  ;;  %v543_v51 = vld [vmem:[%s1059_s2 + $0x48] sm:$0xff] }
  0x11   :  { %v573_v47 = vsel %vm559_vm0, %v541_v45, 0.0  ;;  %v575_v50 = vsel %vm559_vm0, %v542_v48, 0.0  ;;  %v577_v53 = vsel %vm559_vm0, %v543_v51, 0.0  ;;  %v544_v54 = vld [vmem:[%s1059_s2 + $0x50] sm:$0xff]  ;;  %v545_v57 = vld [vmem:[%s1059_s2 + $0x58] sm:$0xff]  ;;  %v546_v60 = vld [vmem:[%s1059_s2 + $0x60] sm:$0xff]  ;;  %v96_v36 = vlaneseq }
  0x12   :  { %153 = vperm.xlu1 %759, %v79_v9   ;;  %148 = vperm.xlu0 %758, %v78_v10   ;;  %v564_v34 = vadd.f32 %v563_v32, %v562_v31  ;;  %v579_v56 = vsel %vm559_vm0, %v544_v54, 0.0  ;;  %v581_v59 = vsel %vm559_vm0, %v545_v57, 0.0  ;;  %v583_v62 = vsel %vm559_vm0, %v546_v60, 0.0  ;;  %v547_v63 = vld [vmem:[%s1059_s2 + $0x68] sm:$0xff]  ;;  %v548_v2 = vld [vmem:[%s1059_s2 + $0x70] sm:$0xff]  ;;  %v549_v5 = vld [vmem:[%s1059_s2 + $0x78] sm:$0xff] }
  0x13   :  { %v585_v1 = vsel %vm559_vm0, %v547_v63, 0.0  ;;  %v587_v4 = vsel %vm559_vm0, %v548_v2, 0.0  ;;  %v589_v7 = vsel %vm559_vm0, %v549_v5, 0.0  ;;  %v550_v8 = vld [vmem:[%s1059_s2 + $0x80] sm:$0xff]  ;;  %v556_v26 = vld [vmem:[%s1059_s2 + $0xb0] sm:$0xff]  ;;  %v557_v29 = vld [vmem:[%s1059_s2 + $0xb8] sm:$0xff] }
  0x14   :  { %v566_v37 = vadd.f32 %v565_v35, %v564_v34  ;;  %v591_v10 = vsel %vm559_vm0, %v550_v8, 0.0  ;;  %v603_v28 = vsel %vm559_vm0, %v556_v26, 0.0  ;;  %v605_v31 = vsel %vm559_vm0, %v557_v29, 0.0  ;;  %v558_v32 = vld [vmem:[%s1059_s2 + $0xc0] sm:$0xff] }
  0x15   :  { %v607_v34 = vsel %vm559_vm0, %v558_v32, 0.0 }
  0x16   :  { %163 = vperm.xlu1 %759, %v81_v11   ;;  %158 = vperm.xlu0 %758, %v80_v12   ;;  %v568_v40 = vadd.f32 %v567_v38, %v566_v37  ;;  %v551_v11 = vld [vmem:[%s1059_s2 + $0x88] sm:$0xff]  ;;  %v982_v37 = vshrl.u32 %v96_v36, 7 }
  0x18   :  { %v570_v43 = vadd.f32 %v569_v41, %v568_v40  ;;  %v98_v38 = vsub.s32 0, %v982_v37  ;;  %v102_v39 = vsub.s32 1, %v982_v37  ;;  %v69_v40 = vld [vmem:[%s1057_s0] sm:$0x3]  ;;  %vm732_vm1 = vcmp.eq.s32.totalorder %v982_v37, 0 }
  0x1a   :  { %173 = vperm.xlu1 %759, %v83_v13   ;;  %168 = vperm.xlu0 %758, %v82_v14   ;;  %v572_v46 = vadd.f32 %v571_v44, %v570_v43  ;;  %v593_v13 = vsel %vm559_vm0, %v551_v11, 0.0  ;;  %v552_v14 = vld [vmem:[%s1059_s2 + $0x90] sm:$0xff]  ;;  %v989_v41 = vrot.slane %v69_v40, %v98_v38  ;;  %v991_v42 = vrot.slane %v69_v40, %v102_v39 }
  0x1c   :  { %v574_v49 = vadd.f32 %v573_v47, %v572_v46 }
  0x1e   :  { %183 = vperm.xlu1 %759, %v85_v15   ;;  %178 = vperm.xlu0 %758, %v84_v16   ;;  %v576_v52 = vadd.f32 %v575_v50, %v574_v49  ;;  %v595_v16 = vsel %vm559_vm0, %v552_v14, 0.0 }
  0x20   :  { %v578_v55 = vadd.f32 %v577_v53, %v576_v52 }
  0x22   :  { %193 = vperm.xlu1 %759, %v87_v17   ;;  %188 = vperm.xlu0 %758, %v86_v18   ;;  %v580_v58 = vadd.f32 %v579_v56, %v578_v55  ;;  %v553_v17 = vld [vmem:[%s1059_s2 + $0x98] sm:$0xff] }
  0x24   :  { %v582_v61 = vadd.f32 %v581_v59, %v580_v58 }
  0x26   :  { %203 = vperm.xlu1 %759, %v89_v19   ;;  %198 = vperm.xlu0 %758, %v88_v20   ;;  %v584_v0 = vadd.f32 %v583_v62, %v582_v61  ;;  %v597_v19 = vsel %vm559_vm0, %v553_v17, 0.0  ;;  %v554_v20 = vld [vmem:[%s1059_s2 + $0xa0] sm:$0xff] }
  0x28   :  { %v586_v3 = vadd.f32 %v585_v1, %v584_v0 }
  0x2a   :  { %213 = vperm.xlu1 %759, %v91_v21   ;;  %208 = vperm.xlu0 %758, %v90_v22   ;;  %v588_v6 = vadd.f32 %v587_v4, %v586_v3  ;;  %v599_v22 = vsel %vm559_vm0, %v554_v20, 0.0 }
  0x2c   :  { %v590_v9 = vadd.f32 %v589_v7, %v588_v6 }
  0x2e   :  { %223 = vperm.xlu1 %759, %v93_v23   ;;  %218 = vperm.xlu0 %758, %v92_v24   ;;  %v592_v12 = vadd.f32 %v591_v10, %v590_v9  ;;  %v555_v23 = vld [vmem:[%s1059_s2 + $0xa8] sm:$0xff] }
  0x30   :  { %v594_v15 = vadd.f32 %v593_v13, %v592_v12 }
  0x32   :  { %228 = vperm.xlu0 %758, %v94_v25   ;;  %v596_v18 = vadd.f32 %v595_v16, %v594_v15  ;;  %v601_v25 = vsel %vm559_vm0, %v555_v23, 0.0 }
  0x34   :  { %v598_v21 = vadd.f32 %v597_v19, %v596_v18 }
  0x36   :  { %v600_v24 = vadd.f32 %v599_v22, %v598_v21 }
  0x38   :  { %v602_v27 = vadd.f32 %v601_v25, %v600_v24 }
  0x3a   :  { %v604_v30 = vadd.f32 %v603_v28, %v602_v27 }
  0x3c   :  { %v606_v33 = vadd.f32 %v605_v31, %v604_v30 }
  0x3e   :  { %v608_v35 = vadd.f32 %v607_v34, %v606_v33 }
  0x52   :  { %609 = vadd.xlane.f32.xlu1 %v608_v35 }
  0x81   :  { %v109_v43 = vpop.permute.xlu0 %108  ;;  %v119_v46 = vpop.permute.xlu1 %118 }
  0x82   :  { %v231_v44 = vsub.f32 %v989_v41, %v109_v43  ;;  %v232_v45 = vsub.f32 %v991_v42, %v109_v43  ;;  %v235_v49 = vsub.f32 %v989_v41, %v119_v46  ;;  %v236_v55 = vsub.f32 %v991_v42, %v119_v46 }
  0x84   :  { %v331_v47 = vmax.f32 %v231_v44, 0.0  ;;  %v332_v48 = vmax.f32 %v232_v45, 0.0  ;;  %v335_v56 = vmax.f32 %v235_v49, 0.0  ;;  %v336_v63 = vmax.f32 %v236_v55, 0.0 }
  0x85   :  { %v114_v50 = vpop.permute.xlu0 %113  ;;  %v124_v59 = vpop.permute.xlu1 %123 }
  0x86   :  { %v381_v51 = vmul.f32 %v331_v47, %v331_v47  ;;  %v382_v52 = vmul.f32 %v332_v48, %v332_v48  ;;  %v233_v53 = vsub.f32 %v989_v41, %v114_v50  ;;  %v234_v54 = vsub.f32 %v991_v42, %v114_v50 }
  0x87   :  { %v237_v61 = vsub.f32 %v989_v41, %v124_v59  ;;  %v385_v1 = vmul.f32 %v335_v56, %v335_v56  ;;  %v238_v2 = vsub.f32 %v991_v42, %v124_v59  ;;  %v386_v9 = vmul.f32 %v336_v63, %v336_v63 }
  0x88   :  { %v333_v57 = vmax.f32 %v233_v53, 0.0  ;;  %v334_v58 = vmax.f32 %v234_v54, 0.0  ;;  %v668_v60 = vadd.f32 %v382_v52, %v381_v51 }
  0x89   :  { %v129_v0 = vpop.permute.xlu0 %128  ;;  %v337_v5 = vmax.f32 %v237_v61, 0.0  ;;  %v134_v8 = vpop.permute.xlu1 %133  ;;  %v338_v10 = vmax.f32 %v238_v2, 0.0 }
  0x8a   :  { %v383_v62 = vmul.f32 %v333_v57, %v333_v57  ;;  %v384_v3 = vmul.f32 %v334_v58, %v334_v58  ;;  %v239_v7 = vsub.f32 %v989_v41, %v129_v0  ;;  %v240_v12 = vsub.f32 %v991_v42, %v129_v0 }
  0x8b   :  { %v387_v13 = vmul.f32 %v337_v5, %v337_v5  ;;  %v241_v15 = vsub.f32 %v989_v41, %v134_v8  ;;  %v388_v18 = vmul.f32 %v338_v10, %v338_v10  ;;  %v242_v19 = vsub.f32 %v991_v42, %v134_v8 }
  0x8c   :  { %v669_v4 = vadd.f32 %v668_v60, %v383_v62  ;;  %v339_v16 = vmax.f32 %v239_v7, 0.0  ;;  %v340_v20 = vmax.f32 %v240_v12, 0.0 }
  0x8d   :  { %v139_v17 = vpop.permute.xlu0 %138  ;;  %v341_v22 = vmax.f32 %v241_v15, 0.0  ;;  %v144_v26 = vpop.permute.xlu1 %143  ;;  %v342_v27 = vmax.f32 %v242_v19, 0.0 }
  0x8e   :  { %v670_v6 = vadd.f32 %v669_v4, %v384_v3  ;;  %v389_v23 = vmul.f32 %v339_v16, %v339_v16  ;;  %v243_v25 = vsub.f32 %v989_v41, %v139_v17  ;;  %v390_v28 = vmul.f32 %v340_v20, %v340_v20 }
  0x8f   :  { %v244_v30 = vsub.f32 %v991_v42, %v139_v17  ;;  %v391_v31 = vmul.f32 %v341_v22, %v341_v22  ;;  %v245_v33 = vsub.f32 %v989_v41, %v144_v26  ;;  %v392_v38 = vmul.f32 %v342_v27, %v342_v27 }
  0x90   :  { %v671_v11 = vadd.f32 %v670_v6, %v385_v1  ;;  %v343_v34 = vmax.f32 %v243_v25, 0.0  ;;  %v246_v40 = vsub.f32 %v991_v42, %v144_v26 }
  0x91   :  { %v149_v35 = vpop.permute.xlu0 %148  ;;  %v344_v43 = vmax.f32 %v244_v30, 0.0  ;;  %v345_v44 = vmax.f32 %v245_v33, 0.0  ;;  %v154_v48 = vpop.permute.xlu1 %153 }
  0x92   :  { %v672_v14 = vadd.f32 %v671_v11, %v386_v9  ;;  %v393_v45 = vmul.f32 %v343_v34, %v343_v34  ;;  %v247_v47 = vsub.f32 %v989_v41, %v149_v35  ;;  %v346_v49 = vmax.f32 %v246_v40, 0.0 }
  0x93   :  { %v394_v50 = vmul.f32 %v344_v43, %v344_v43  ;;  %v248_v52 = vsub.f32 %v991_v42, %v149_v35  ;;  %v395_v53 = vmul.f32 %v345_v44, %v345_v44  ;;  %v249_v55 = vsub.f32 %v989_v41, %v154_v48 }
  0x94   :  { %v673_v21 = vadd.f32 %v672_v14, %v387_v13  ;;  %v347_v56 = vmax.f32 %v247_v47, 0.0  ;;  %v396_v58 = vmul.f32 %v346_v49, %v346_v49  ;;  %v250_v60 = vsub.f32 %v991_v42, %v154_v48 }
  0x95   :  { %v159_v57 = vpop.permute.xlu0 %158  ;;  %v348_v61 = vmax.f32 %v248_v52, 0.0  ;;  %v349_v62 = vmax.f32 %v249_v55, 0.0  ;;  %v164_v2 = vpop.permute.xlu1 %163 }
  0x96   :  { %v674_v24 = vadd.f32 %v673_v21, %v388_v18  ;;  %v397_v63 = vmul.f32 %v347_v56, %v347_v56  ;;  %v251_v1 = vsub.f32 %v989_v41, %v159_v57  ;;  %v350_v3 = vmax.f32 %v250_v60, 0.0 }
  0x97   :  { %v398_v4 = vmul.f32 %v348_v61, %v348_v61  ;;  %v252_v6 = vsub.f32 %v991_v42, %v159_v57  ;;  %v399_v7 = vmul.f32 %v349_v62, %v349_v62  ;;  %v253_v9 = vsub.f32 %v989_v41, %v164_v2 }
  0x98   :  { %v675_v29 = vadd.f32 %v674_v24, %v389_v23  ;;  %v351_v10 = vmax.f32 %v251_v1, 0.0  ;;  %v400_v12 = vmul.f32 %v350_v3, %v350_v3  ;;  %v254_v14 = vsub.f32 %v991_v42, %v164_v2 }
  0x99   :  { %v169_v11 = vpop.permute.xlu0 %168  ;;  %v352_v15 = vmax.f32 %v252_v6, 0.0  ;;  %v353_v16 = vmax.f32 %v253_v9, 0.0  ;;  %v174_v20 = vpop.permute.xlu1 %173 }
  0x9a   :  { %v676_v32 = vadd.f32 %v675_v29, %v390_v28  ;;  %v401_v17 = vmul.f32 %v351_v10, %v351_v10  ;;  %v255_v19 = vsub.f32 %v989_v41, %v169_v11  ;;  %v354_v21 = vmax.f32 %v254_v14, 0.0 }
  0x9b   :  { %v402_v22 = vmul.f32 %v352_v15, %v352_v15  ;;  %v256_v24 = vsub.f32 %v991_v42, %v169_v11  ;;  %v403_v25 = vmul.f32 %v353_v16, %v353_v16  ;;  %v257_v27 = vsub.f32 %v989_v41, %v174_v20 }
  0x9c   :  { %v677_v39 = vadd.f32 %v676_v32, %v391_v31  ;;  %v355_v28 = vmax.f32 %v255_v19, 0.0  ;;  %v404_v30 = vmul.f32 %v354_v21, %v354_v21  ;;  %v258_v32 = vsub.f32 %v991_v42, %v174_v20 }
  0x9d   :  { %v179_v29 = vpop.permute.xlu0 %178  ;;  %v356_v33 = vmax.f32 %v256_v24, 0.0  ;;  %v357_v34 = vmax.f32 %v257_v27, 0.0  ;;  %v184_v40 = vpop.permute.xlu1 %183 }
  0x9e   :  { %v678_v46 = vadd.f32 %v677_v39, %v392_v38  ;;  %v405_v35 = vmul.f32 %v355_v28, %v355_v28  ;;  %v259_v39 = vsub.f32 %v989_v41, %v179_v29  ;;  %v358_v43 = vmax.f32 %v258_v32, 0.0 }
  0x9f   :  { %v406_v44 = vmul.f32 %v356_v33, %v356_v33  ;;  %v407_v47 = vmul.f32 %v357_v34, %v357_v34  ;;  %v261_v49 = vsub.f32 %v989_v41, %v184_v40 }
  0xa0   :  { %v679_v51 = vadd.f32 %v678_v46, %v393_v45  ;;  %v260_v46 = vsub.f32 %v991_v42, %v179_v29  ;;  %v408_v52 = vmul.f32 %v358_v43, %v358_v43 }
  0xa1   :  { %v361_v56 = vmax.f32 %v261_v49, 0.0  ;;  %v194_v60 = vpop.permute.xlu1 %193 }
  0xa2   :  { %v680_v54 = vadd.f32 %v679_v51, %v394_v50  ;;  %v359_v50 = vmax.f32 %v259_v39, 0.0  ;;  %v189_v51 = vpop.permute.xlu0 %188  ;;  %v360_v55 = vmax.f32 %v260_v46, 0.0  ;;  %v265_v3 = vsub.f32 %v989_v41, %v194_v60 }
  0xa3   :  { %v411_v1 = vmul.f32 %v361_v56, %v361_v56 }
  0xa4   :  { %v681_v59 = vadd.f32 %v680_v54, %v395_v53  ;;  %v262_v54 = vsub.f32 %v991_v42, %v184_v40  ;;  %v409_v57 = vmul.f32 %v359_v50, %v359_v50  ;;  %v410_v62 = vmul.f32 %v360_v55, %v360_v55 }
  0xa5   :  { %v365_v10 = vmax.f32 %v265_v3, 0.0  ;;  %v204_v14 = vpop.permute.xlu1 %203 }
  0xa6   :  { %v682_v0 = vadd.f32 %v681_v59, %v396_v58  ;;  %v263_v59 = vsub.f32 %v989_v41, %v189_v51  ;;  %v362_v61 = vmax.f32 %v262_v54, 0.0  ;;  %v269_v21 = vsub.f32 %v989_v41, %v204_v14 }
  0xa7   :  { %v415_v19 = vmul.f32 %v365_v10, %v365_v10 }
  0xa8   :  { %v683_v5 = vadd.f32 %v682_v0, %v397_v63  ;;  %v264_v0 = vsub.f32 %v991_v42, %v189_v51  ;;  %v412_v6 = vmul.f32 %v362_v61, %v362_v61  ;;  %v369_v28 = vmax.f32 %v269_v21, 0.0 }
  0xa9   :  { %v214_v32 = vpop.permute.xlu1 %213 }
  0xaa   :  { %v684_v8 = vadd.f32 %v683_v5, %v398_v4  ;;  %v363_v4 = vmax.f32 %v263_v59, 0.0  ;;  %v199_v5 = vpop.permute.xlu0 %198  ;;  %v364_v9 = vmax.f32 %v264_v0, 0.0  ;;  %v419_v39 = vmul.f32 %v369_v28, %v369_v28 }
  0xab   :  { %v273_v43 = vsub.f32 %v989_v41, %v214_v32 }
  0xac   :  { %v685_v13 = vadd.f32 %v684_v8, %v399_v7  ;;  %v266_v8 = vsub.f32 %v991_v42, %v194_v60  ;;  %v413_v11 = vmul.f32 %v363_v4, %v363_v4  ;;  %v414_v16 = vmul.f32 %v364_v9, %v364_v9 }
  0xad   :  { %v373_v50 = vmax.f32 %v273_v43, 0.0  ;;  %v224_v54 = vpop.permute.xlu1 %223 }
  0xae   :  { %v686_v18 = vadd.f32 %v685_v13, %v400_v12  ;;  %v267_v13 = vsub.f32 %v989_v41, %v199_v5  ;;  %v366_v15 = vmax.f32 %v266_v8, 0.0  ;;  %v277_v61 = vsub.f32 %v989_v41, %v224_v54 }
  0xaf   :  { %v423_v59 = vmul.f32 %v373_v50, %v373_v50 }
  0xb0   :  { %v687_v23 = vadd.f32 %v686_v18, %v401_v17  ;;  %v268_v18 = vsub.f32 %v991_v42, %v199_v5  ;;  %v416_v24 = vmul.f32 %v366_v15, %v366_v15  ;;  %v377_v4 = vmax.f32 %v277_v61, 0.0 }
  0xb2   :  { %v688_v26 = vadd.f32 %v687_v23, %v402_v22  ;;  %v367_v22 = vmax.f32 %v267_v13, 0.0  ;;  %v209_v23 = vpop.permute.xlu0 %208  ;;  %v368_v27 = vmax.f32 %v268_v18, 0.0 }
  0xb4   :  { %v689_v31 = vadd.f32 %v688_v26, %v403_v25  ;;  %v270_v26 = vsub.f32 %v991_v42, %v204_v14  ;;  %v417_v29 = vmul.f32 %v367_v22, %v367_v22  ;;  %v418_v34 = vmul.f32 %v368_v27, %v368_v27 }
  0xb6   :  { %v690_v38 = vadd.f32 %v689_v31, %v404_v30  ;;  %v271_v31 = vsub.f32 %v989_v41, %v209_v23  ;;  %v370_v33 = vmax.f32 %v270_v26, 0.0 }
  0xb8   :  { %v691_v45 = vadd.f32 %v690_v38, %v405_v35  ;;  %v272_v38 = vsub.f32 %v991_v42, %v209_v23  ;;  %v420_v46 = vmul.f32 %v370_v33, %v370_v33 }
  0xba   :  { %v692_v48 = vadd.f32 %v691_v45, %v406_v44  ;;  %v371_v44 = vmax.f32 %v271_v31, 0.0  ;;  %v219_v45 = vpop.permute.xlu0 %218  ;;  %v372_v49 = vmax.f32 %v272_v38, 0.0 }
  0xbc   :  { %v693_v53 = vadd.f32 %v692_v48, %v407_v47  ;;  %v274_v48 = vsub.f32 %v991_v42, %v214_v32  ;;  %v421_v51 = vmul.f32 %v371_v44, %v371_v44  ;;  %v422_v56 = vmul.f32 %v372_v49, %v372_v49 }
  0xbe   :  { %v694_v58 = vadd.f32 %v693_v53, %v408_v52  ;;  %v275_v53 = vsub.f32 %v989_v41, %v219_v45  ;;  %v374_v55 = vmax.f32 %v274_v48, 0.0 }
  0xc0   :  { %v695_v63 = vadd.f32 %v694_v58, %v409_v57  ;;  %v276_v58 = vsub.f32 %v991_v42, %v219_v45  ;;  %v424_v0 = vmul.f32 %v374_v55, %v374_v55 }
  0xc2   :  { %v696_v2 = vadd.f32 %v695_v63, %v410_v62  ;;  %v375_v62 = vmax.f32 %v275_v53, 0.0  ;;  %v229_v63 = vpop.permute.xlu0 %228  ;;  %v376_v3 = vmax.f32 %v276_v58, 0.0 }
  0xc4   :  { %v697_v7 = vadd.f32 %v696_v2, %v411_v1  ;;  %v278_v2 = vsub.f32 %v991_v42, %v224_v54  ;;  %v425_v5 = vmul.f32 %v375_v62, %v375_v62  ;;  %v426_v9 = vmul.f32 %v376_v3, %v376_v3 }
  0xc6   :  { %v698_v12 = vadd.f32 %v697_v7, %v412_v6  ;;  %v279_v7 = vsub.f32 %v989_v41, %v229_v63  ;;  %v378_v8 = vmax.f32 %v278_v2, 0.0 }
  0xc8   :  { %v699_v17 = vadd.f32 %v698_v12, %v413_v11  ;;  %v280_v11 = vsub.f32 %v991_v42, %v229_v63  ;;  %v427_v12 = vmul.f32 %v377_v4, %v377_v4  ;;  %v379_v14 = vmax.f32 %v279_v7, 0.0 }
  0xc9   :  { %v428_v15 = vmul.f32 %v378_v8, %v378_v8 }
  0xca   :  { %v700_v20 = vadd.f32 %v699_v17, %v414_v16  ;;  %v380_v17 = vmax.f32 %v280_v11, 0.0  ;;  %v429_v18 = vmul.f32 %v379_v14, %v379_v14 }
  0xcc   :  { %v701_v25 = vadd.f32 %v700_v20, %v415_v19  ;;  %v430_v20 = vmul.f32 %v380_v17, %v380_v17 }
  0xce   :  { %v702_v30 = vadd.f32 %v701_v25, %v416_v24 }
  0xd0   :  { %v703_v35 = vadd.f32 %v702_v30, %v417_v29 }
  0xd2   :  { %v704_v40 = vadd.f32 %v703_v35, %v418_v34  ;;  %v731_v35 = vand.u32 127, %v96_v36 }
  0xd4   :  { %v705_v47 = vadd.f32 %v704_v40, %v419_v39  ;;  %vm733_vm2 = vcmp.eq.s32.totalorder %v731_v35, 0 }
  0xd5   :  { %vm734_vm3 = vmand %vm732_vm1, %vm733_vm2 }
  0xd6   :  { %v706_v52 = vadd.f32 %v705_v47, %v420_v46 }
  0xd8   :  { %v707_v57 = vadd.f32 %v706_v52, %v421_v51 }
  0xda   :  { %v708_v60 = vadd.f32 %v707_v57, %v422_v56 }
  0xdc   :  { %v709_v1 = vadd.f32 %v708_v60, %v423_v59 }
  0xde   :  { %v710_v6 = vadd.f32 %v709_v1, %v424_v0 }
  0xdf   :  { %v610_v23 = vpop.xlane.xlu1 %609 }
  0xe0   :  { %v711_v10 = vadd.f32 %v710_v6, %v425_v5  ;;  %v611_v24 = vrot.slane %v610_v23, 4 }
  0xe2   :  { %v712_v13 = vadd.f32 %v711_v10, %v426_v9  ;;  %v612_v41 = vadd.f32 %v611_v24, %v610_v23 }
  0xe4   :  { %v713_v16 = vadd.f32 %v712_v13, %v427_v12  ;;  %v613_v25 = vrot.slane %v612_v41, 2 }
  0xe6   :  { %v714_v19 = vadd.f32 %v713_v16, %v428_v15  ;;  %v614_v26 = vadd.f32 %v613_v25, %v612_v41 }
  0xe8   :  { %v715_v21 = vadd.f32 %v714_v19, %v429_v18  ;;  %v615_v27 = vrot.slane %v614_v26, 1 }
  0xea   :  { %v716_v22 = vadd.f32 %v715_v21, %v430_v20  ;;  %v616_v28 = vadd.f32 %v615_v27, %v614_v26 }
  0xec   :  { %717 = vadd.xlane.f32.xlu0 %v716_v22  ;;  %752 = vpush %v616_v28 }
 0x11d   :  { %s753_s0 = spop %752 }
 0x179   :  { %v718_v42 = vpop.xlane.xlu0 %717 }
 0x17a   :  { %v719_v29 = vrot.slane %v718_v42, 4 }
 0x17c   :  { %v720_v30 = vadd.f32 %v719_v29, %v718_v42 }
 0x17e   :  { %v721_v31 = vrot.slane %v720_v30, 2 }
 0x180   :  { %v722_v32 = vadd.f32 %v721_v31, %v720_v30 }
 0x182   :  { %v723_v33 = vrot.slane %v722_v32, 1 }
 0x184   :  { %v724_v34 = vadd.f32 %v723_v33, %v722_v32 }
 0x186   :  { %754 = vpush %v724_v34 }
 0x1b7   :  { %s755_s2 = spop %754 }
 0x1b8   :  { %s726_s4 = sadd.f32 %s755_s2, %s753_s0 }
 0x1ba   :  { %s727_s7 = smul.f32 0.005, %s726_s4 }
 0x1bc   :  { %v735_v38 = vstv %s727_s7 }
 0x1bd   :  { %v736_v39 = vsel %vm734_vm3, %v735_v38, 0.0 }
 0x1be   :  { %737 = vst [vmem:[#allocation3] sm:$0xff] %v736_v39 }
 0x1bf   :  { %771 = shalt.err (!%p768_p4)
}
 0x1c0   :  { %s772_s11 = scalar_lea.hbm %s1060_s3, 128 }
 0x1c1   :  { %p773_p5 = scmp.ne.s32.totalorder %s1060_s3, %s772_s11  ;;  %p776_p6 = scmp.lt.u32.totalorder %s772_s11, %s1060_s3 }
 0x1c3   :  { %p778_p7 = pnand %p776_p6, %p773_p5 }
 0x1c5   :  { %781 = shalt.err (!%p778_p7)
}
 0x1c6   :  { %747 = dma.vmem_to_hbm [thread:$0]  %s745_s6, 128, %s1060_s3, [#allocation4]  }
 0x1c7   :  { %782 = dma.done.wait [#allocation4], 128  }
 0x1c8   :  { %783 = vsyncadd [#allocation4], 4294967168 }
 0x1c9   :  { %751 = vsyncpa [#allocation4], 1 }

</bundles_post_ra>
